<compile_context>
chip_gen: v5e
topology: v5e:2x2
jax: 0.10.0
libtpu: 0.0.40
codegen_flags: <defaults>
</compile_context>

<pallas_src>
import functools

import jax
import jax.numpy as jnp
from jax.experimental import pallas as pl
from jax.experimental.pallas import tpu as pltpu


# ---------------------------------------------------------------------------
# Kernel
# ---------------------------------------------------------------------------
def customnet_kernel(x_ref,
                     w1_ref, b1_ref,
                     w2_ref, b2_ref,
                     w3_ref, b3_ref,
                     w4_ref, b4_ref,
                     wo_ref, bo_ref,
                     out_ref):
    """One (TILE_BF, L) folded batch tile of the fused CustomNet forward.

    Folded layout: L = F * W_seg lanes; each vector row packs F batch samples
    (one per W_seg-lane segment).  Weights are block-diagonal so segments never
    mix.

    x_ref  : (TILE_BF, L)  folded, feature-padded input tile (bf16/f32),
                           streamed per grid step.  Already zero-padded to
                           W_seg features, so it IS the skip tensor.
    w*_ref : (L, L)        block-diagonal folded Linear weights (resident)
    b*_ref : (1, L)        f32 folded biases (resident)
    wo_ref : (L, F)        f32 block-diagonal folded head weight (resident)
    bo_ref : (1, F)        f32 tiled head bias (resident)
    out_ref: (TILE_BF, F)  f32 folded output tile (sample i*F+f -> [i, f])
    """
    x = x_ref[...]
    s = x.astype(jnp.float32)          # skip = pad(x, width - dim), pre-built

    def dense(v, w_ref, b_ref):
        # Narrow (bf16/f32) MXU operands, f32 accumulation, f32 bias add.
        return (jnp.dot(v.astype(w_ref.dtype), w_ref[...],
                        preferred_element_type=jnp.float32)
                + b_ref[...])

    def sigmoid(v):
        # sigmoid(v) = 0.5 * (tanh(0.5*v) + 1): single EUP op + one VPU fma.
        return 0.5 * (jnp.tanh(0.5 * v) + 1.0)

    # Block 1: y = sigmoid(fc2(sigmoid(fc1(x)))) + s
    y = sigmoid(dense(x, w1_ref, b1_ref))
    y = sigmoid(dense(y, w2_ref, b2_ref)) + s
    s = y

    # Block 2: y = sigmoid(fc4(sigmoid(fc3(y)))) + s
    y = sigmoid(dense(y, w3_ref, b3_ref))
    y = sigmoid(dense(y, w4_ref, b4_ref)) + s

    # Folded head: block-diagonal (L -> F) matmul gives F packed scalars/row.
    # (tile_bf, F) store is lane-narrow but only tile_bf*F*4 bytes per tile.
    out = (jnp.dot(y, wo_ref[...], preferred_element_type=jnp.float32)
           + bo_ref[...])
    out_ref[...] = out.astype(out_ref.dtype)


# ---------------------------------------------------------------------------
# Parameter prep
# ---------------------------------------------------------------------------
def _round_up(a, b):
    return (a + b - 1) // b * b


def _fold_config(width):
    """Segment width W_seg (zero-padded width) and fold factor F = 128/W_seg."""
    if width <= 128:
        w_seg = 1 << max(0, (width - 1).bit_length())     # next power of two
        fold = 128 // w_seg
    else:
        w_seg = _round_up(width, 128)
        fold = 1
    return w_seg, fold


def init_params(key, dim, width):
    """kaiming_normal_ weights / normal_ biases, PyTorch Linear shapes
    pre-transposed to (in_features, out_features)."""
    def linear(k, fan_in, fan_out):
        kw, kb = jax.random.split(k)
        w = jax.random.normal(kw, (fan_in, fan_out), jnp.float32) * jnp.sqrt(2.0 / fan_in)
        b = jax.random.normal(kb, (1, fan_out), jnp.float32)
        return w, b

    keys = jax.random.split(key, 5)
    w1, b1 = linear(keys[0], dim, width)
    w2, b2 = linear(keys[1], width, width)
    w3, b3 = linear(keys[2], width, width)
    w4, b4 = linear(keys[3], width, width)
    wo, bo = linear(keys[4], width, 1)
    return dict(w1=w1, b1=b1, w2=w2, b2=b2, w3=w3, b3=b3, w4=w4, b4=b4,
                wo=wo, bo=bo)


def prepare_params(params, dim, width, matmul_dtype=jnp.bfloat16):
    """Fold parameters for the kernel:
      * hidden width zero-padded to a power-of-two segment width W_seg,
      * F = 128 // W_seg batch samples packed per vector row,
      * Linear weights -> (L, L) block-diagonal, biases tiled F times,
      * head (width -> 1) -> (L, F) block-diagonal column, bias tiled (1, F).
    Padded weight ROWS / bias / head entries are exactly zero, which keeps the
    0.5-valued padded lanes neutral."""
    del dim  # fc1's extra input rows are already zero via pad_block
    w_seg, fold = _fold_config(width)
    eye = jnp.eye(fold, dtype=jnp.float32)

    def pad_block(w):
        blk = jnp.zeros((w_seg, w_seg), jnp.float32)
        return blk.at[:w.shape[0], :w.shape[1]].set(w.astype(jnp.float32))

    def fold_w(w):                                   # (L, L) block diagonal
        return jnp.kron(eye, pad_block(w)).astype(matmul_dtype)

    def fold_b(b):                                   # (1, L) f32
        row = jnp.zeros((1, w_seg), jnp.float32)
        row = row.at[:, :b.shape[1]].set(b.astype(jnp.float32))
        return jnp.tile(row, (1, fold))

    wo_col = jnp.zeros((w_seg, 1), jnp.float32)
    wo_col = wo_col.at[:width, :].set(params["wo"].astype(jnp.float32))
    wo_fold = jnp.kron(eye, wo_col)                  # (L, F) f32
    bo_fold = jnp.tile(params["bo"].reshape(1, 1).astype(jnp.float32),
                       (1, fold))                    # (1, F) f32

    return dict(
        w1=fold_w(params["w1"]), b1=fold_b(params["b1"]),
        w2=fold_w(params["w2"]), b2=fold_b(params["b2"]),
        w3=fold_w(params["w3"]), b3=fold_b(params["b3"]),
        w4=fold_w(params["w4"]), b4=fold_b(params["b4"]),
        wo=wo_fold, bo=bo_fold,
    )


# ---------------------------------------------------------------------------
# Wrapper
# ---------------------------------------------------------------------------
@functools.partial(jax.jit, static_argnames=("tile_bf",))
def customnet_forward(x, pparams, tile_bf=128):
    """x: (B, dim).  pparams: output of prepare_params.  Returns (B, 1) f32."""
    B, dim = x.shape
    L = pparams["w1"].shape[0]
    fold = pparams["bo"].shape[1]
    w_seg = L // fold
    matmul_dtype = pparams["w1"].dtype

    # Feature-pad x to the segment width: pad(x, width-dim) then IS x, so the
    # kernel needs no scratch buffer / masked partial stores for the skip.
    x = jnp.pad(x, ((0, 0), (0, w_seg - dim)))

    # Fold `fold` samples per vector row; pad folded batch to a whole grid.
    bf_needed = -(-B // fold)
    tile_bf = _round_up(int(min(tile_bf, _round_up(bf_needed, 8))), 8)
    bf = _round_up(bf_needed, tile_bf)
    bp = bf * fold
    if bp != B:
        x = jnp.pad(x, ((0, bp - B), (0, 0)))
    x = x.reshape(bf, L).astype(matmul_dtype)        # stream activations narrow
    num_tiles = bf // tile_bf

    # Constant index_map => block fetched once, stays VMEM-resident (~130 KB).
    # If width is ever scaled up: add pipeline_mode=pl.Buffered(1) here and an
    # explicit vmem_limit_bytes (constant-index blocks gain nothing from
    # double-buffering; v7x has 64 MiB VMEM vs 128 MiB on v5e/v6e).
    resident = lambda shape: pl.BlockSpec(shape, lambda i: (0, 0))

    out = pl.pallas_call(
        customnet_kernel,
        grid=(num_tiles,),
        in_specs=[
            pl.BlockSpec((tile_bf, L), lambda i: (i, 0)),    # streamed x tile
            resident((L, L)), resident((1, L)),              # fc1
            resident((L, L)), resident((1, L)),              # fc2
            resident((L, L)), resident((1, L)),              # fc3
            resident((L, L)), resident((1, L)),              # fc4
            resident((L, fold)), resident((1, fold)),        # folded head
        ],
        out_specs=pl.BlockSpec((tile_bf, fold), lambda i: (i, 0)),
        out_shape=jax.ShapeDtypeStruct((bf, fold), jnp.float32),
        compiler_params=pltpu.CompilerParams(
            dimension_semantics=("parallel",),               # megacore on v7x
        ),
    )(x,
      pparams["w1"], pparams["b1"], pparams["w2"], pparams["b2"],
      pparams["w3"], pparams["b3"], pparams["w4"], pparams["b4"],
      pparams["wo"], pparams["bo"])

    # Unfold: row i, segment f  ->  sample i*fold + f.
    return out.reshape(bp, 1)[:B]


# ---------------------------------------------------------------------------
# Pure-JAX reference (unfolded params, same dtype policy as the kernel)
# ---------------------------------------------------------------------------
def reference_forward(x, params, width, matmul_dtype=jnp.float32):
    dim = x.shape[1]
    md = matmul_dtype
    xm = x.astype(md)
    s = jnp.pad(xm.astype(jnp.float32), ((0, 0), (0, width - dim)))

    def dense(v, w, b):
        return (jnp.dot(v.astype(md), w.astype(md),
                        preferred_element_type=jnp.float32)
                + b.astype(jnp.float32))

    y = jax.nn.sigmoid(dense(xm, params["w1"], params["b1"]))
    y = jax.nn.sigmoid(dense(y, params["w2"], params["b2"])) + s
    s = y
    y = jax.nn.sigmoid(dense(y, params["w3"], params["b3"]))
    y = jax.nn.sigmoid(dense(y, params["w4"], params["b4"])) + s
    return (jnp.dot(y, params["wo"].astype(jnp.float32))
            + params["bo"].astype(jnp.float32))


if __name__ == "__main__":
    dim, width, beta = 16, 32, 1.0      # beta is unused by forward()
    batch, tile_bf = 1024, 64           # folded grid of 4 tiles (>=2 per TC on v7x)

    key = jax.random.PRNGKey(0)
    kx, kp = jax.random.split(key)
    x = jax.random.normal(kx, (batch, dim), jnp.float32)
    params = init_params(kp, dim, width)

    # f32 path: must match the reference tightly (proves that the lane padding,
    # batch folding, wrapper-side skip and the folded head preserve semantics).
    pp_f32 = prepare_params(params, dim, width, matmul_dtype=jnp.float32)
    out_f32 = jax.block_until_ready(customnet_forward(x, pp_f32, tile_bf=tile_bf))
    ref_f32 = reference_forward(x, params, width, matmul_dtype=jnp.float32)
    assert out_f32.shape == (batch, 1)
    assert jnp.allclose(out_f32, ref_f32, atol=2e-4, rtol=2e-4), \
        float(jnp.max(jnp.abs(out_f32 - ref_f32)))

    # bf16 path (recommended default on v6e/v7x): bf16 MXU operands + halved
    # streamed-x DMA bytes; accumulation / bias / sigmoid / head stay f32.
    pp_bf16 = prepare_params(params, dim, width, matmul_dtype=jnp.bfloat16)
    out_bf16 = jax.block_until_ready(customnet_forward(x, pp_bf16, tile_bf=tile_bf))
    ref_bf16 = reference_forward(x, params, width, matmul_dtype=jnp.bfloat16)
    assert out_bf16.shape == (batch, 1)
    assert jnp.allclose(out_bf16, ref_bf16, atol=2e-2, rtol=2e-2), \
        float(jnp.max(jnp.abs(out_bf16 - ref_bf16)))

    # Ragged batch: exercises the fold / grid padding path.
    xr = jax.random.normal(kx, (37, dim), jnp.float32)
    out_r = jax.block_until_ready(customnet_forward(xr, pp_f32, tile_bf=tile_bf))
    ref_r = reference_forward(xr, params, width, matmul_dtype=jnp.float32)
    assert out_r.shape == (37, 1)
    assert jnp.allclose(out_r, ref_r, atol=2e-4, rtol=2e-4), \
        float(jnp.max(jnp.abs(out_r - ref_r)))

    print("KERNEL_OK")
</pallas_src>

<mosaic_0001>
module attributes {stable_mosaic.version = 11 : i64} {
  func.func @customnet_kernel(%arg0: i32, %arg1: memref<64x128xf32, #tpu.memory_space<vmem>>, %arg2: memref<128x128xf32, #tpu.memory_space<vmem>>, %arg3: memref<1x128xf32, #tpu.memory_space<vmem>>, %arg4: memref<128x128xf32, #tpu.memory_space<vmem>>, %arg5: memref<1x128xf32, #tpu.memory_space<vmem>>, %arg6: memref<128x128xf32, #tpu.memory_space<vmem>>, %arg7: memref<1x128xf32, #tpu.memory_space<vmem>>, %arg8: memref<128x128xf32, #tpu.memory_space<vmem>>, %arg9: memref<1x128xf32, #tpu.memory_space<vmem>>, %arg10: memref<128x4xf32, #tpu.memory_space<vmem>>, %arg11: memref<1x4xf32, #tpu.memory_space<vmem>>, %arg12: memref<64x4xf32, #tpu.memory_space<vmem>>) attributes {dimension_semantics = [#tpu.dimension_semantics<parallel>], iteration_bounds = array<i64: 4>, scalar_prefetch = 0 : i64, scratch_operands = 0 : i64, tpu.core_type = #tpu.core_type<tc>, window_params = [{transform_indices = @transform_0, window_bounds = array<i64: 64, 128>}, {pipeline_mode = #tpu.pipeline_mode<synchronous>, transform_indices = @transform_1, window_bounds = array<i64: 128, 128>}, {pipeline_mode = #tpu.pipeline_mode<synchronous>, transform_indices = @transform_2, window_bounds = array<i64: 1, 128>}, {pipeline_mode = #tpu.pipeline_mode<synchronous>, transform_indices = @transform_3, window_bounds = array<i64: 128, 128>}, {pipeline_mode = #tpu.pipeline_mode<synchronous>, transform_indices = @transform_4, window_bounds = array<i64: 1, 128>}, {pipeline_mode = #tpu.pipeline_mode<synchronous>, transform_indices = @transform_5, window_bounds = array<i64: 128, 128>}, {pipeline_mode = #tpu.pipeline_mode<synchronous>, transform_indices = @transform_6, window_bounds = array<i64: 1, 128>}, {pipeline_mode = #tpu.pipeline_mode<synchronous>, transform_indices = @transform_7, window_bounds = array<i64: 128, 128>}, {pipeline_mode = #tpu.pipeline_mode<synchronous>, transform_indices = @transform_8, window_bounds = array<i64: 1, 128>}, {pipeline_mode = #tpu.pipeline_mode<synchronous>, transform_indices = @transform_9, window_bounds = array<i64: 128, 4>}, {pipeline_mode = #tpu.pipeline_mode<synchronous>, transform_indices = @transform_10, window_bounds = array<i64: 1, 4>}, {transform_indices = @transform_11, window_bounds = array<i64: 64, 4>}]} {
    %c0 = arith.constant 0 : index
    %c0_0 = arith.constant 0 : index
    %0 = vector.load %arg1[%c0, %c0_0] : memref<64x128xf32, #tpu.memory_space<vmem>>, vector<64x128xf32>
    %c0_1 = arith.constant 0 : index
    %c0_2 = arith.constant 0 : index
    %1 = vector.load %arg2[%c0_1, %c0_2] : memref<128x128xf32, #tpu.memory_space<vmem>>, vector<128x128xf32>
    %cst = arith.constant dense<0.000000e+00> : vector<64x128xf32>
    %2 = tpu.matmul %0, %1, %cst {dimension_numbers = #tpu.dot_dimension_numbers<[1], [0], [0], [1], [0, 0, 1, 1], [], []>} : vector<64x128xf32>, vector<128x128xf32>, vector<64x128xf32> -> vector<64x128xf32>
    %c0_3 = arith.constant 0 : index
    %c0_4 = arith.constant 0 : index
    %3 = vector.load %arg3[%c0_3, %c0_4] : memref<1x128xf32, #tpu.memory_space<vmem>>, vector<1x128xf32>
    %4 = vector.broadcast %3 : vector<1x128xf32> to vector<64x128xf32>
    %5 = arith.addf %2, %4 : vector<64x128xf32>
    %cst_5 = arith.constant 5.000000e-01 : f32
    %6 = vector.broadcast %cst_5 : f32 to vector<64x128xf32>
    %7 = arith.mulf %6, %5 : vector<64x128xf32>
    %8 = math.tanh %7 : vector<64x128xf32>
    %cst_6 = arith.constant 1.000000e+00 : f32
    %9 = vector.broadcast %cst_6 : f32 to vector<64x128xf32>
    %10 = arith.addf %8, %9 : vector<64x128xf32>
    %cst_7 = arith.constant 5.000000e-01 : f32
    %11 = vector.broadcast %cst_7 : f32 to vector<64x128xf32>
    %12 = arith.mulf %11, %10 : vector<64x128xf32>
    %c0_8 = arith.constant 0 : index
    %c0_9 = arith.constant 0 : index
    %13 = vector.load %arg4[%c0_8, %c0_9] : memref<128x128xf32, #tpu.memory_space<vmem>>, vector<128x128xf32>
    %cst_10 = arith.constant dense<0.000000e+00> : vector<64x128xf32>
    %14 = tpu.matmul %12, %13, %cst_10 {dimension_numbers = #tpu.dot_dimension_numbers<[1], [0], [0], [1], [0, 0, 1, 1], [], []>} : vector<64x128xf32>, vector<128x128xf32>, vector<64x128xf32> -> vector<64x128xf32>
    %c0_11 = arith.constant 0 : index
    %c0_12 = arith.constant 0 : index
    %15 = vector.load %arg5[%c0_11, %c0_12] : memref<1x128xf32, #tpu.memory_space<vmem>>, vector<1x128xf32>
    %16 = vector.broadcast %15 : vector<1x128xf32> to vector<64x128xf32>
    %17 = arith.addf %14, %16 : vector<64x128xf32>
    %cst_13 = arith.constant 5.000000e-01 : f32
    %18 = vector.broadcast %cst_13 : f32 to vector<64x128xf32>
    %19 = arith.mulf %18, %17 : vector<64x128xf32>
    %20 = math.tanh %19 : vector<64x128xf32>
    %cst_14 = arith.constant 1.000000e+00 : f32
    %21 = vector.broadcast %cst_14 : f32 to vector<64x128xf32>
    %22 = arith.addf %20, %21 : vector<64x128xf32>
    %cst_15 = arith.constant 5.000000e-01 : f32
    %23 = vector.broadcast %cst_15 : f32 to vector<64x128xf32>
    %24 = arith.mulf %23, %22 : vector<64x128xf32>
    %25 = arith.addf %24, %0 : vector<64x128xf32>
    %c0_16 = arith.constant 0 : index
    %c0_17 = arith.constant 0 : index
    %26 = vector.load %arg6[%c0_16, %c0_17] : memref<128x128xf32, #tpu.memory_space<vmem>>, vector<128x128xf32>
    %cst_18 = arith.constant dense<0.000000e+00> : vector<64x128xf32>
    %27 = tpu.matmul %25, %26, %cst_18 {dimension_numbers = #tpu.dot_dimension_numbers<[1], [0], [0], [1], [0, 0, 1, 1], [], []>} : vector<64x128xf32>, vector<128x128xf32>, vector<64x128xf32> -> vector<64x128xf32>
    %c0_19 = arith.constant 0 : index
    %c0_20 = arith.constant 0 : index
    %28 = vector.load %arg7[%c0_19, %c0_20] : memref<1x128xf32, #tpu.memory_space<vmem>>, vector<1x128xf32>
    %29 = vector.broadcast %28 : vector<1x128xf32> to vector<64x128xf32>
    %30 = arith.addf %27, %29 : vector<64x128xf32>
    %cst_21 = arith.constant 5.000000e-01 : f32
    %31 = vector.broadcast %cst_21 : f32 to vector<64x128xf32>
    %32 = arith.mulf %31, %30 : vector<64x128xf32>
    %33 = math.tanh %32 : vector<64x128xf32>
    %cst_22 = arith.constant 1.000000e+00 : f32
    %34 = vector.broadcast %cst_22 : f32 to vector<64x128xf32>
    %35 = arith.addf %33, %34 : vector<64x128xf32>
    %cst_23 = arith.constant 5.000000e-01 : f32
    %36 = vector.broadcast %cst_23 : f32 to vector<64x128xf32>
    %37 = arith.mulf %36, %35 : vector<64x128xf32>
    %c0_24 = arith.constant 0 : index
    %c0_25 = arith.constant 0 : index
    %38 = vector.load %arg8[%c0_24, %c0_25] : memref<128x128xf32, #tpu.memory_space<vmem>>, vector<128x128xf32>
    %cst_26 = arith.constant dense<0.000000e+00> : vector<64x128xf32>
    %39 = tpu.matmul %37, %38, %cst_26 {dimension_numbers = #tpu.dot_dimension_numbers<[1], [0], [0], [1], [0, 0, 1, 1], [], []>} : vector<64x128xf32>, vector<128x128xf32>, vector<64x128xf32> -> vector<64x128xf32>
    %c0_27 = arith.constant 0 : index
    %c0_28 = arith.constant 0 : index
    %40 = vector.load %arg9[%c0_27, %c0_28] : memref<1x128xf32, #tpu.memory_space<vmem>>, vector<1x128xf32>
    %41 = vector.broadcast %40 : vector<1x128xf32> to vector<64x128xf32>
    %42 = arith.addf %39, %41 : vector<64x128xf32>
    %cst_29 = arith.constant 5.000000e-01 : f32
    %43 = vector.broadcast %cst_29 : f32 to vector<64x128xf32>
    %44 = arith.mulf %43, %42 : vector<64x128xf32>
    %45 = math.tanh %44 : vector<64x128xf32>
    %cst_30 = arith.constant 1.000000e+00 : f32
    %46 = vector.broadcast %cst_30 : f32 to vector<64x128xf32>
    %47 = arith.addf %45, %46 : vector<64x128xf32>
    %cst_31 = arith.constant 5.000000e-01 : f32
    %48 = vector.broadcast %cst_31 : f32 to vector<64x128xf32>
    %49 = arith.mulf %48, %47 : vector<64x128xf32>
    %50 = arith.addf %49, %25 : vector<64x128xf32>
    %c0_32 = arith.constant 0 : index
    %c0_33 = arith.constant 0 : index
    %51 = vector.load %arg10[%c0_32, %c0_33] : memref<128x4xf32, #tpu.memory_space<vmem>>, vector<128x4xf32>
    %cst_34 = arith.constant dense<0.000000e+00> : vector<64x4xf32>
    %52 = tpu.matmul %50, %51, %cst_34 {dimension_numbers = #tpu.dot_dimension_numbers<[1], [0], [0], [1], [0, 0, 1, 1], [], []>} : vector<64x128xf32>, vector<128x4xf32>, vector<64x4xf32> -> vector<64x4xf32>
    %c0_35 = arith.constant 0 : index
    %c0_36 = arith.constant 0 : index
    %53 = vector.load %arg11[%c0_35, %c0_36] : memref<1x4xf32, #tpu.memory_space<vmem>>, vector<1x4xf32>
    %54 = vector.broadcast %53 : vector<1x4xf32> to vector<64x4xf32>
    %55 = arith.addf %52, %54 : vector<64x4xf32>
    %c0_37 = arith.constant 0 : index
    %c0_38 = arith.constant 0 : index
    %56 = vector.load %arg12[%c0_37, %c0_38] : memref<64x4xf32, #tpu.memory_space<vmem>>, vector<64x4xf32>
    tpu.vector_store %arg12[%c0_37, %c0_38], %55 {strides = array<i32>} : memref<64x4xf32, #tpu.memory_space<vmem>>, vector<64x4xf32>,
    return
  }
  func.func @transform_0(%arg0: i32) -> (i32, i32) {
    %c0_i32 = arith.constant 0 : i32
    %c0_i32_0 = arith.constant 0 : i32
    return %arg0, %c0_i32 : i32, i32
  }
  func.func @transform_1(%arg0: i32) -> (i32, i32) {
    %c0_i32 = arith.constant 0 : i32
    %c0_i32_0 = arith.constant 0 : i32
    %c0_i32_1 = arith.constant 0 : i32
    return %c0_i32, %c0_i32_0 : i32, i32
  }
  func.func @transform_2(%arg0: i32) -> (i32, i32) {
    %c0_i32 = arith.constant 0 : i32
    %c0_i32_0 = arith.constant 0 : i32
    %c0_i32_1 = arith.constant 0 : i32
    return %c0_i32, %c0_i32_0 : i32, i32
  }
  func.func @transform_3(%arg0: i32) -> (i32, i32) {
    %c0_i32 = arith.constant 0 : i32
    %c0_i32_0 = arith.constant 0 : i32
    %c0_i32_1 = arith.constant 0 : i32
    return %c0_i32, %c0_i32_0 : i32, i32
  }
  func.func @transform_4(%arg0: i32) -> (i32, i32) {
    %c0_i32 = arith.constant 0 : i32
    %c0_i32_0 = arith.constant 0 : i32
    %c0_i32_1 = arith.constant 0 : i32
    return %c0_i32, %c0_i32_0 : i32, i32
  }
  func.func @transform_5(%arg0: i32) -> (i32, i32) {
    %c0_i32 = arith.constant 0 : i32
    %c0_i32_0 = arith.constant 0 : i32
    %c0_i32_1 = arith.constant 0 : i32
    return %c0_i32, %c0_i32_0 : i32, i32
  }
  func.func @transform_6(%arg0: i32) -> (i32, i32) {
    %c0_i32 = arith.constant 0 : i32
    %c0_i32_0 = arith.constant 0 : i32
    %c0_i32_1 = arith.constant 0 : i32
    return %c0_i32, %c0_i32_0 : i32, i32
  }
  func.func @transform_7(%arg0: i32) -> (i32, i32) {
    %c0_i32 = arith.constant 0 : i32
    %c0_i32_0 = arith.constant 0 : i32
    %c0_i32_1 = arith.constant 0 : i32
    return %c0_i32, %c0_i32_0 : i32, i32
  }
  func.func @transform_8(%arg0: i32) -> (i32, i32) {
    %c0_i32 = arith.constant 0 : i32
    %c0_i32_0 = arith.constant 0 : i32
    %c0_i32_1 = arith.constant 0 : i32
    return %c0_i32, %c0_i32_0 : i32, i32
  }
  func.func @transform_9(%arg0: i32) -> (i32, i32) {
    %c0_i32 = arith.constant 0 : i32
    %c0_i32_0 = arith.constant 0 : i32
    %c0_i32_1 = arith.constant 0 : i32
    return %c0_i32, %c0_i32_0 : i32, i32
  }
  func.func @transform_10(%arg0: i32) -> (i32, i32) {
    %c0_i32 = arith.constant 0 : i32
    %c0_i32_0 = arith.constant 0 : i32
    %c0_i32_1 = arith.constant 0 : i32
    return %c0_i32, %c0_i32_0 : i32, i32
  }
  func.func @transform_11(%arg0: i32) -> (i32, i32) {
    %c0_i32 = arith.constant 0 : i32
    %c0_i32_0 = arith.constant 0 : i32
    return %arg0, %c0_i32 : i32, i32
  }
}

</mosaic_0001>

<bundles_post_ra>
// kernel: customnet_forward.1
= control target key start
LH: loop header
LB: loop body
LE: loop exit
PB: predicated region body
PF: predicated region fallthrough
CT: control target
= control target key end

     0   :  { %s1100_s17 = smov 0   ;;  %s1481_s0 = inlined_call_operand.vmem [shape: f32[256,128], index: 0, kind: input, shape index: {}]   ;;  %s1482_s1 = inlined_call_operand.vmem [shape: f32[128,128], index: 1, kind: input, shape index: {}]   ;;  %s1483_s2 = inlined_call_operand.vmem [shape: f32[1,128], index: 2, kind: input, shape index: {}]   ;;  %s1484_s3 = inlined_call_operand.vmem [shape: f32[128,128], index: 3, kind: input, shape index: {}]   ;;  %s1485_s4 = inlined_call_operand.vmem [shape: f32[1,128], index: 4, kind: input, shape index: {}]   ;;  %s1486_s5 = inlined_call_operand.vmem [shape: f32[128,128], index: 5, kind: input, shape index: {}]   ;;  %s1487_s6 = inlined_call_operand.vmem [shape: f32[1,128], index: 6, kind: input, shape index: {}]   ;;  %s1488_s7 = inlined_call_operand.vmem [shape: f32[128,128], index: 7, kind: input, shape index: {}]   ;;  %s1489_s8 = inlined_call_operand.vmem [shape: f32[1,128], index: 8, kind: input, shape index: {}]   ;;  %s1490_s9 = inlined_call_operand.vmem [shape: f32[128,4], index: 9, kind: input, shape index: {}]   ;;  %s1491_s10 = inlined_call_operand.vmem [shape: f32[1,4], index: 10, kind: input, shape index: {}]   ;;  %s1492_s11 = inlined_call_operand.vmem [shape: f32[256,4], index: 11, kind: output, shape index: {}]  }
   0x1 LB: > { %s912_s18 = sadd.s32 4294967295, %s1038_s17   ;;  %p916_p0 = scmp.ge.s32.totalorder %s1038_s17, 1  ;;  %s1038_s17 = sphi %s1100_s17, %s21_s17  }
   0x2   : > { %p338_p1 = scmp.lt.s32.totalorder %s1038_s17, 5 }
   0x4   : > { %p339_p2 = pnand %p916_p0, %p338_p1 }
   0x5   : > { %s917_s16 = sshll.u32 (!%p339_p2), %s912_s18, 3 }
   0x6   : > { %342 = sbr.rel (%p339_p2) target bundleno = 814 (0x32e), region = 64  ;;  %p379_p3 = scmp.lt.s32.totalorder (!%p339_p2), %s917_s16, 31 }
   0xb   : > { %v413_v0 = vld [vmem:[%s1482_s1 + $0x78] sm:$0xff]  ;;  %v412_v1 = vld [vmem:[%s1482_s1 + $0x70] sm:$0xff]  ;;  %v411_v2 = vld [vmem:[%s1482_s1 + $0x68] sm:$0xff]  ;;  %s1494_s16 = smov (!%p379_p3, %s917_s16), 31  ;;  %vm847_vm0 = vcmask 31744  }
   0xc   : > { %418 = vmatpush.msra.mxu0 %v413_v0  ;;  %923 = vmatpush.msra.mxu1 %v413_v0  ;;  %v410_v3 = vld [vmem:[%s1482_s1 + $0x60] sm:$0xff]  ;;  %v409_v4 = vld [vmem:[%s1482_s1 + $0x58] sm:$0xff]  ;;  %v408_v5 = vld [vmem:[%s1482_s1 + $0x50] sm:$0xff]  ;;  %s918_s28 = sshll.u32 %s1494_s16, 3 }
   0xd   : > { %v407_v6 = vld [vmem:[%s1482_s1 + $0x48] sm:$0xff]  ;;  %v406_v7 = vld [vmem:[%s1482_s1 + $0x40] sm:$0xff]  ;;  %v405_v8 = vld [vmem:[%s1482_s1 + $0x38] sm:$0xff]  ;;  %s1161_s19 = scalar_lea.vmem %s1481_s0, %s918_s28  ;;  %s388_s15 = scalar_lea.vmem %s1492_s11, %s918_s28 }
   0xe   : > { %419 = vmatpush.msra.mxu0 %v412_v1  ;;  %924 = vmatpush.msra.mxu1 %v412_v1  ;;  %v404_v9 = vld [vmem:[%s1482_s1 + $0x30] sm:$0xff]  ;;  %v403_v10 = vld [vmem:[%s1482_s1 + $0x28] sm:$0xff]  ;;  %v402_v11 = vld [vmem:[%s1482_s1 + $0x20] sm:$0xff] }
   0xf   : > { %v401_v12 = vld [vmem:[%s1482_s1 + $0x18] sm:$0xff]  ;;  %v400_v13 = vld [vmem:[%s1482_s1 + $0x10] sm:$0xff]  ;;  %v399_v14 = vld [vmem:[%s1482_s1 + $0x8] sm:$0xff] }
  0x10   : > { %420 = vmatpush.msra.mxu0 %v411_v2  ;;  %925 = vmatpush.msra.mxu1 %v411_v2  ;;  %v398_v15 = vld [vmem:[%s1482_s1] sm:$0xff]  ;;  %v506_v18 = vld [vmem:[%s1484_s3 + $0x78] sm:$0xff]  ;;  %v505_v19 = vld [vmem:[%s1484_s3 + $0x70] sm:$0xff] }
  0x11   : > { %v1167_v16 = vld [vmem:[%s1161_s19] sm:$0xff]  ;;  %v504_v20 = vld [vmem:[%s1484_s3 + $0x68] sm:$0xff]  ;;  %v502_v24 = vld [vmem:[%s1484_s3 + $0x58] sm:$0xff] }
  0x12   : > { %421 = vmatpush.msra.mxu0 %v410_v3  ;;  %926 = vmatpush.msra.mxu1 %v410_v3  ;;  %v1170_v17 = vld [vmem:[%s1161_s19 + $0x20] sm:$0xff]  ;;  %v1187_v22 = vld [vmem:[%s1161_s19 + $0x8] sm:$0xff]  ;;  %v501_v25 = vld [vmem:[%s1484_s3 + $0x50] sm:$0xff] }
  0x13   : > { %v503_v21 = vld [vmem:[%s1484_s3 + $0x60] sm:$0xff]  ;;  %v1190_v23 = vld [vmem:[%s1161_s19 + $0x28] sm:$0xff]  ;;  %v1207_v28 = vld [vmem:[%s1161_s19 + $0x10] sm:$0xff] }
  0x14   : > { %422 = vmatpush.msra.mxu0 %v409_v4  ;;  %927 = vmatpush.msra.mxu1 %v409_v4  ;;  %v500_v26 = vld [vmem:[%s1484_s3 + $0x48] sm:$0xff]  ;;  %v499_v27 = vld [vmem:[%s1484_s3 + $0x40] sm:$0xff]  ;;  %v1210_v29 = vld [vmem:[%s1161_s19 + $0x30] sm:$0xff] }
  0x15   : > { %v1215_v30 = vld [vmem:[%s1161_s19 + $0x18] sm:$0xff]  ;;  %v497_v33 = vld [vmem:[%s1484_s3 + $0x30] sm:$0xff]  ;;  %v496_v34 = vld [vmem:[%s1484_s3 + $0x28] sm:$0xff] }
  0x16   : > { %423 = vmatpush.msra.mxu0 %v408_v5  ;;  %928 = vmatpush.msra.mxu1 %v408_v5  ;;  %v1218_v31 = vld [vmem:[%s1161_s19 + $0x38] sm:$0xff]  ;;  %v495_v35 = vld [vmem:[%s1484_s3 + $0x20] sm:$0xff]  ;;  %v493_v37 = vld [vmem:[%s1484_s3 + $0x10] sm:$0xff] }
  0x17   : > { %v498_v32 = vld [vmem:[%s1484_s3 + $0x38] sm:$0xff]  ;;  %v492_v38 = vld [vmem:[%s1484_s3 + $0x8] sm:$0xff]  ;;  %v491_v39 = vld [vmem:[%s1484_s3] sm:$0xff] }
  0x18   : > { %424 = vmatpush.msra.mxu0 %v407_v6  ;;  %929 = vmatpush.msra.mxu1 %v407_v6  ;;  %v494_v36 = vld [vmem:[%s1484_s3 + $0x18] sm:$0xff]  ;;  %v963_v40 = vld [vmem:[%s1483_s2] ss:$0 sm:$0xff] }
  0x1a   : > { %425 = vmatpush.msra.mxu0 %v406_v7  ;;  %930 = vmatpush.msra.mxu1 %v406_v7 }
  0x1c   : > { %426 = vmatpush.msra.mxu0 %v405_v8  ;;  %931 = vmatpush.msra.mxu1 %v405_v8 }
  0x1e   : > { %427 = vmatpush.msra.mxu0 %v404_v9  ;;  %932 = vmatpush.msra.mxu1 %v404_v9 }
  0x20   : > { %428 = vmatpush.msra.mxu0 %v403_v10  ;;  %933 = vmatpush.msra.mxu1 %v403_v10 }
  0x22   : > { %429 = vmatpush.msra.mxu0 %v402_v11  ;;  %934 = vmatpush.msra.mxu1 %v402_v11  ;;  %v607_v11 = vld [vmem:[%s1486_s5 + $0x78] sm:$0xff] }
  0x23   : > { %612 = vmatpush.msra.mxu2 %v607_v11 }
  0x24   : > { %430 = vmatpush.msra.mxu0 %v401_v12  ;;  %935 = vmatpush.msra.mxu1 %v401_v12  ;;  %v606_v12 = vld [vmem:[%s1486_s5 + $0x70] sm:$0xff] }
  0x25   : > { %613 = vmatpush.msra.mxu2 %v606_v12 }
  0x26   : > { %431 = vmatpush.msra.mxu0 %v400_v13  ;;  %936 = vmatpush.msra.mxu1 %v400_v13  ;;  %v605_v13 = vld [vmem:[%s1486_s5 + $0x68] sm:$0xff] }
  0x27   : > { %614 = vmatpush.msra.mxu2 %v605_v13 }
  0x28   : > { %432 = vmatpush.msra.mxu0 %v399_v14  ;;  %937 = vmatpush.msra.mxu1 %v399_v14 }
  0x2a   : > { %433 = vmatpush.msra.mxu0 %v398_v15  ;;  %938 = vmatpush.msra.mxu1 %v398_v15 }
  0x2b   : > { %434 = vmatmul.f32.vlgmr.msra.gmra.mxu0 %v1167_v16  ;;  %446 = vmatmul.f32.vlgmr.msra.gmra.mxu1 %v1170_v17 }
  0x2c   : > { %511 = vmatpush.msrb.mxu1 %v506_v18 }
  0x2e   : > { %512 = vmatpush.msrb.mxu1 %v505_v19  ;;  %v604_v19 = vld [vmem:[%s1486_s5 + $0x60] sm:$0xff] }
  0x2f   : > { %615 = vmatpush.msra.mxu2 %v604_v19  ;;  %v699_v19 = vld [vmem:[%s1488_s7 + $0x70] sm:$0xff] }
  0x30   : > { %513 = vmatpush.msrb.mxu1 %v504_v20 }
  0x32   : > { %514 = vmatpush.msrb.mxu1 %v503_v21  ;;  %v603_v21 = vld [vmem:[%s1486_s5 + $0x58] sm:$0xff] }
  0x33   : > { %437 = vmatmul.f32.gmra.mxu0 %v1187_v22  ;;  %449 = vmatmul.f32.gmra.mxu1 %v1190_v23 }
  0x34   : > { %515 = vmatpush.msrb.mxu1 %v502_v24  ;;  %616 = vmatpush.msra.mxu2 %v603_v21 }
  0x36   : > { %516 = vmatpush.msrb.mxu1 %v501_v25 }
  0x38   : > { %517 = vmatpush.msrb.mxu1 %v500_v26  ;;  %v602_v26 = vld [vmem:[%s1486_s5 + $0x50] sm:$0xff] }
  0x39   : > { %617 = vmatpush.msra.mxu2 %v602_v26  ;;  %v697_v26 = vld [vmem:[%s1488_s7 + $0x60] sm:$0xff] }
  0x3a   : > { %518 = vmatpush.msrb.mxu1 %v499_v27  ;;  %v601_v27 = vld [vmem:[%s1486_s5 + $0x48] sm:$0xff] }
  0x3b   : > { %440 = vmatmul.f32.gmra.mxu0 %v1207_v28  ;;  %452 = vmatmul.f32.gmra.mxu1 %v1210_v29 }
  0x3c   : > { %519 = vmatpush.msrb.mxu1 %v498_v32  ;;  %618 = vmatpush.msra.mxu2 %v601_v27 }
  0x3e   : > { %520 = vmatpush.msrb.mxu1 %v497_v33 }
  0x40   : > { %521 = vmatpush.msrb.mxu1 %v496_v34 }
  0x42   : > { %522 = vmatpush.msrb.mxu1 %v495_v35 }
  0x43   : > { %443 = vmatmul.f32.gmra.mxu0 %v1215_v30  ;;  %455 = vmatmul.f32.gmra.mxu1 %v1218_v31 }
  0x44   : > { %523 = vmatpush.msrb.mxu1 %v494_v36 }
  0x46   : > { %524 = vmatpush.msrb.mxu1 %v493_v37 }
  0x48   : > { %525 = vmatpush.msrb.mxu1 %v492_v38 }
  0x4a   : > { %526 = vmatpush.msrb.mxu1 %v491_v39 }
  0xa8   : > { %v435_v41 = vpop.f32.mrf.mxu0  ;;  %v447_v50 = vpop.f32.mrf.mxu1 }
  0xa9   : > { %v436_v42 = vadd.f32 %v963_v40, %v435_v41  ;;  %v448_v57 = vadd.f32 %v963_v40, %v447_v50  ;;  %v599_v41 = vld [vmem:[%s1486_s5 + $0x38] sm:$0xff] }
  0xab   : > { %v459_v43 = vmul.f32 0.5, %v436_v42  ;;  %v463_v63 = vmul.f32 0.5, %v448_v57  ;;  %v598_v42 = vld [vmem:[%s1486_s5 + $0x30] sm:$0xff] }
  0xad   : > { %968 = vtanh.f32 %v459_v43  ;;  %v597_v43 = vld [vmem:[%s1486_s5 + $0x28] sm:$0xff] }
  0xb0   : > { %v438_v44 = vpop.f32.mrf.mxu0  ;;  %v450_v59 = vpop.f32.mrf.mxu1 }
  0xb1   : > { %v439_v45 = vadd.f32 %v963_v40, %v438_v44  ;;  %v451_v2 = vadd.f32 %v963_v40, %v450_v59  ;;  %v596_v44 = vld [vmem:[%s1486_s5 + $0x20] sm:$0xff] }
  0xb3   : > { %v969_v46 = vpop.eup %968  ;;  %v460_v47 = vmul.f32 0.5, %v439_v45  ;;  %v464_v5 = vmul.f32 0.5, %v451_v2  ;;  %v595_v45 = vld [vmem:[%s1486_s5 + $0x18] sm:$0xff] }
  0xb4   : > { %v475_v48 = vadd.f32 1.0, %v969_v46  ;;  %v594_v46 = vld [vmem:[%s1486_s5 + $0x10] sm:$0xff] }
  0xb5   : > { %970 = vtanh.f32 %v460_v47  ;;  %v593_v47 = vld [vmem:[%s1486_s5 + $0x8] sm:$0xff] }
  0xb6   : > { %v483_v49 = vmul.f32 0.5, %v475_v48  ;;  %v592_v48 = vld [vmem:[%s1486_s5] sm:$0xff] }
  0xb8   : > { %v441_v51 = vpop.f32.mrf.mxu0  ;;  %527 = vmatmul.f32.vlgmr.msrb.gmra.mxu1 %v483_v49  ;;  %v453_v3 = vpop.f32.mrf.mxu1  ;;  %v1300_v49 = vld [vmem:[%s1485_s4] ss:$0 sm:$0xff] }
  0xb9   : > { %v442_v52 = vadd.f32 %v963_v40, %v441_v51  ;;  %v454_v9 = vadd.f32 %v963_v40, %v453_v3 }
  0xbb   : > { %v971_v53 = vpop.eup %970  ;;  %v461_v54 = vmul.f32 0.5, %v442_v52  ;;  %v465_v14 = vmul.f32 0.5, %v454_v9 }
  0xbc   : > { %v476_v55 = vadd.f32 1.0, %v971_v53 }
  0xbd   : > { %972 = vtanh.f32 %v461_v54 }
  0xbe   : > { %v484_v56 = vmul.f32 0.5, %v476_v55 }
  0xc0   : > { %v444_v58 = vpop.f32.mrf.mxu0  ;;  %530 = vmatmul.f32.gmra.mxu1 %v484_v56  ;;  %v456_v18 = vpop.f32.mrf.mxu1 }
  0xc1   : > { %v445_v60 = vadd.f32 %v963_v40, %v444_v58  ;;  %v457_v24 = vadd.f32 %v963_v40, %v456_v18  ;;  %v600_v40 = vld [vmem:[%s1486_s5 + $0x40] sm:$0xff] }
  0xc2   : > { %619 = vmatpush.msra.mxu2 %v600_v40  ;;  %v693_v40 = vld [vmem:[%s1488_s7 + $0x40] sm:$0xff] }
  0xc3   : > { %v973_v61 = vpop.eup %972  ;;  %v462_v62 = vmul.f32 0.5, %v445_v60  ;;  %v466_v32 = vmul.f32 0.5, %v457_v24 }
  0xc4   : > { %v477_v0 = vadd.f32 1.0, %v973_v61  ;;  %620 = vmatpush.msra.mxu2 %v599_v41 }
  0xc5   : > { %974 = vtanh.f32 %v462_v62 }
  0xc6   : > { %v485_v1 = vmul.f32 0.5, %v477_v0  ;;  %976 = vtanh.f32 %v463_v63  ;;  %621 = vmatpush.msra.mxu2 %v598_v42 }
  0xc7   : > { %978 = vtanh.f32 %v464_v5 }
  0xc8   : > { %533 = vmatmul.f32.gmra.mxu1 %v485_v1  ;;  %980 = vtanh.f32 %v465_v14  ;;  %622 = vmatpush.msra.mxu2 %v597_v43 }
  0xc9   : > { %982 = vtanh.f32 %v466_v32 }
  0xca   : > { %623 = vmatpush.msra.mxu2 %v596_v44 }
  0xcb   : > { %v975_v4 = vpop.eup %974 }
  0xcc   : > { %v478_v6 = vadd.f32 1.0, %v975_v4  ;;  %v977_v7 = vpop.eup %976  ;;  %624 = vmatpush.msra.mxu2 %v595_v45 }
  0xcd   : > { %v479_v10 = vadd.f32 1.0, %v977_v7  ;;  %v979_v20 = vpop.eup %978 }
  0xce   : > { %v486_v8 = vmul.f32 0.5, %v478_v6  ;;  %v480_v25 = vadd.f32 1.0, %v979_v20  ;;  %v981_v34 = vpop.eup %980  ;;  %625 = vmatpush.msra.mxu2 %v594_v46 }
  0xcf   : > { %v487_v15 = vmul.f32 0.5, %v479_v10  ;;  %v481_v35 = vadd.f32 1.0, %v981_v34  ;;  %v983_v37 = vpop.eup %982 }
  0xd0   : > { %536 = vmatmul.f32.gmra.mxu1 %v486_v8  ;;  %v488_v33 = vmul.f32 0.5, %v480_v25  ;;  %v482_v38 = vadd.f32 1.0, %v983_v37  ;;  %626 = vmatpush.msra.mxu2 %v593_v47 }
  0xd1   : > { %v489_v36 = vmul.f32 0.5, %v481_v35  ;;  %v695_v35 = vld [vmem:[%s1488_s7 + $0x50] sm:$0xff] }
  0xd2   : > { %v490_v39 = vmul.f32 0.5, %v482_v38  ;;  %627 = vmatpush.msra.mxu2 %v592_v48 }
  0xd8   : > { %539 = vmatmul.f32.gmra.mxu1 %v487_v15 }
  0xe0   : > { %542 = vmatmul.f32.gmra.mxu1 %v488_v33  ;;  %v696_v33 = vld [vmem:[%s1488_s7 + $0x58] sm:$0xff] }
  0xe8   : > { %545 = vmatmul.f32.gmra.mxu1 %v489_v36 }
  0xf0   : > { %548 = vmatmul.f32.gmra.mxu1 %v490_v39 }
 0x135   : > { %v528_v50 = vpop.f32.mrf.mxu1 }
 0x136   : > { %v529_v51 = vadd.f32 %v1300_v49, %v528_v50 }
 0x138   : > { %v552_v52 = vmul.f32 0.5, %v529_v51 }
 0x13a   : > { %984 = vtanh.f32 %v552_v52 }
 0x13d   : > { %v531_v53 = vpop.f32.mrf.mxu1 }
 0x13e   : > { %v532_v54 = vadd.f32 %v1300_v49, %v531_v53  ;;  %v690_v53 = vld [vmem:[%s1488_s7 + $0x28] sm:$0xff] }
 0x140   : > { %v985_v55 = vpop.eup %984  ;;  %v553_v56 = vmul.f32 0.5, %v532_v54  ;;  %v688_v54 = vld [vmem:[%s1488_s7 + $0x18] sm:$0xff] }
 0x141   : > { %v568_v57 = vadd.f32 1.0, %v985_v55  ;;  %v687_v55 = vld [vmem:[%s1488_s7 + $0x10] sm:$0xff] }
 0x142   : > { %986 = vtanh.f32 %v553_v56  ;;  %v686_v56 = vld [vmem:[%s1488_s7 + $0x8] sm:$0xff] }
 0x143   : > { %v576_v58 = vmul.f32 0.5, %v568_v57  ;;  %v685_v57 = vld [vmem:[%s1488_s7] sm:$0xff] }
 0x145   : > { %v534_v59 = vpop.f32.mrf.mxu1  ;;  %v1305_v60 = vadd.f32 %v576_v58, %v1167_v16  ;;  %v1393_v58 = vld [vmem:[%s1487_s6] ss:$0 sm:$0xff] }
 0x146   : > { %v535_v61 = vadd.f32 %v1300_v49, %v534_v59 }
 0x147   : > { %628 = vmatmul.f32.vlgmr.msra.gmra.mxu2 %v1305_v60 }
 0x148   : > { %v987_v62 = vpop.eup %986  ;;  %v554_v63 = vmul.f32 0.5, %v535_v61 }
 0x149   : > { %v569_v0 = vadd.f32 1.0, %v987_v62 }
 0x14a   : > { %988 = vtanh.f32 %v554_v63 }
 0x14b   : > { %v577_v1 = vmul.f32 0.5, %v569_v0 }
 0x14d   : > { %v537_v2 = vpop.f32.mrf.mxu1  ;;  %v1310_v3 = vadd.f32 %v577_v1, %v1187_v22 }
 0x14e   : > { %v538_v4 = vadd.f32 %v1300_v49, %v537_v2 }
 0x14f   : > { %631 = vmatmul.f32.gmra.mxu2 %v1310_v3 }
 0x150   : > { %v989_v5 = vpop.eup %988  ;;  %v555_v16 = vmul.f32 0.5, %v538_v4 }
 0x151   : > { %v570_v6 = vadd.f32 1.0, %v989_v5 }
 0x152   : > { %990 = vtanh.f32 %v555_v16 }
 0x153   : > { %v578_v7 = vmul.f32 0.5, %v570_v6 }
 0x155   : > { %v540_v8 = vpop.f32.mrf.mxu1  ;;  %v1315_v9 = vadd.f32 %v578_v7, %v1207_v28  ;;  %v700_v28 = vld [vmem:[%s1488_s7 + $0x78] sm:$0xff] }
 0x156   : > { %v541_v10 = vadd.f32 %v1300_v49, %v540_v8  ;;  %705 = vmatpush.msra.mxu3 %v700_v28 }
 0x157   : > { %634 = vmatmul.f32.gmra.mxu2 %v1315_v9 }
 0x158   : > { %v991_v11 = vpop.eup %990  ;;  %v556_v22 = vmul.f32 0.5, %v541_v10  ;;  %706 = vmatpush.msra.mxu3 %v699_v19 }
 0x159   : > { %v571_v12 = vadd.f32 1.0, %v991_v11 }
 0x15a   : > { %992 = vtanh.f32 %v556_v22 }
 0x15b   : > { %v579_v13 = vmul.f32 0.5, %v571_v12 }
 0x15d   : > { %v543_v14 = vpop.f32.mrf.mxu1  ;;  %v1320_v15 = vadd.f32 %v579_v13, %v1215_v30  ;;  %v698_v30 = vld [vmem:[%s1488_s7 + $0x68] sm:$0xff] }
 0x15e   : > { %v544_v18 = vadd.f32 %v1300_v49, %v543_v14  ;;  %707 = vmatpush.msra.mxu3 %v698_v30 }
 0x15f   : > { %637 = vmatmul.f32.gmra.mxu2 %v1320_v15 }
 0x160   : > { %v993_v20 = vpop.eup %992  ;;  %v557_v21 = vmul.f32 0.5, %v544_v18  ;;  %708 = vmatpush.msra.mxu3 %v697_v26 }
 0x161   : > { %v572_v24 = vadd.f32 1.0, %v993_v20 }
 0x162   : > { %994 = vtanh.f32 %v557_v21  ;;  %709 = vmatpush.msra.mxu3 %v696_v33  ;;  %v800_v33 = vld [vmem:[%s1490_s9 + $0x70] sm:$0xff] }
 0x163   : > { %v580_v25 = vmul.f32 0.5, %v572_v24 }
 0x164   : > { %710 = vmatpush.msra.mxu3 %v695_v35  ;;  %v799_v35 = vld [vmem:[%s1490_s9 + $0x68] sm:$0xff] }
 0x165   : > { %v546_v27 = vpop.f32.mrf.mxu1  ;;  %v1337_v32 = vadd.f32 %v580_v25, %v1170_v17  ;;  %v694_v17 = vld [vmem:[%s1488_s7 + $0x48] sm:$0xff] }
 0x166   : > { %v547_v34 = vadd.f32 %v1300_v49, %v546_v27  ;;  %711 = vmatpush.msra.mxu3 %v694_v17  ;;  %v801_v27 = vld [vmem:[%s1490_s9 + $0x78] sm:$0xff]  ;;  %v798_v17 = vld [vmem:[%s1490_s9 + $0x60] sm:$0xff] }
 0x167   : > { %640 = vmatmul.f32.gmra.mxu2 %v1337_v32  ;;  %806 = vmatpush.msrb.mxu0 %v801_v27 }
 0x168   : > { %v995_v36 = vpop.eup %994  ;;  %v558_v37 = vmul.f32 0.5, %v547_v34  ;;  %712 = vmatpush.msra.mxu3 %v693_v40  ;;  %939 = vmatpush.msrb.mxu2 %v801_v27  ;;  %v797_v40 = vld [vmem:[%s1490_s9 + $0x58] sm:$0xff] }
 0x169   : > { %v573_v38 = vadd.f32 1.0, %v995_v36  ;;  %807 = vmatpush.msrb.mxu0 %v800_v33 }
 0x16a   : > { %996 = vtanh.f32 %v558_v37  ;;  %940 = vmatpush.msrb.mxu2 %v800_v33 }
 0x16b   : > { %v581_v39 = vmul.f32 0.5, %v573_v38  ;;  %808 = vmatpush.msrb.mxu0 %v799_v35 }
 0x16c   : > { %941 = vmatpush.msrb.mxu2 %v799_v35 }
 0x16d   : > { %v549_v41 = vpop.f32.mrf.mxu1  ;;  %v1354_v42 = vadd.f32 %v581_v39, %v1190_v23  ;;  %809 = vmatpush.msrb.mxu0 %v798_v17 }
 0x16e   : > { %v550_v43 = vadd.f32 %v1300_v49, %v549_v41  ;;  %v692_v49 = vld [vmem:[%s1488_s7 + $0x38] sm:$0xff]  ;;  %942 = vmatpush.msrb.mxu2 %v798_v17 }
 0x16f   : > { %643 = vmatmul.f32.gmra.mxu2 %v1354_v42  ;;  %713 = vmatpush.msra.mxu3 %v692_v49 }
 0x170   : > { %v997_v44 = vpop.eup %996  ;;  %v559_v45 = vmul.f32 0.5, %v550_v43  ;;  %v796_v43 = vld [vmem:[%s1490_s9 + $0x50] sm:$0xff]  ;;  %810 = vmatpush.msrb.mxu0 %v797_v40  ;;  %943 = vmatpush.msrb.mxu2 %v797_v40 }
 0x171   : > { %v574_v46 = vadd.f32 1.0, %v997_v44 }
 0x172   : > { %998 = vtanh.f32 %v559_v45  ;;  %v795_v45 = vld [vmem:[%s1490_s9 + $0x48] sm:$0xff]  ;;  %811 = vmatpush.msrb.mxu0 %v796_v43  ;;  %944 = vmatpush.msrb.mxu2 %v796_v43 }
 0x173   : > { %v582_v47 = vmul.f32 0.5, %v574_v46 }
 0x174   : > { %812 = vmatpush.msrb.mxu0 %v795_v45  ;;  %945 = vmatpush.msrb.mxu2 %v795_v45 }
 0x175   : > { %v1359_v48 = vadd.f32 %v582_v47, %v1210_v29  ;;  %v691_v29 = vld [vmem:[%s1488_s7 + $0x30] sm:$0xff] }
 0x176   : > { %714 = vmatpush.msra.mxu3 %v691_v29 }
 0x177   : > { %646 = vmatmul.f32.gmra.mxu2 %v1359_v48 }
 0x178   : > { %v999_v50 = vpop.eup %998  ;;  %715 = vmatpush.msra.mxu3 %v690_v53 }
 0x179   : > { %v575_v51 = vadd.f32 1.0, %v999_v50 }
 0x17b   : > { %v583_v52 = vmul.f32 0.5, %v575_v51 }
 0x17d   : > { %v1363_v23 = vadd.f32 %v583_v52, %v1218_v31  ;;  %v689_v31 = vld [vmem:[%s1488_s7 + $0x20] sm:$0xff] }
 0x17e   : > { %716 = vmatpush.msra.mxu3 %v689_v31 }
 0x17f   : > { %649 = vmatmul.f32.gmra.mxu2 %v1363_v23 }
 0x180   : > { %717 = vmatpush.msra.mxu3 %v688_v54 }
 0x182   : > { %718 = vmatpush.msra.mxu3 %v687_v55 }
 0x184   : > { %719 = vmatpush.msra.mxu3 %v686_v56 }
 0x186   : > { %720 = vmatpush.msra.mxu3 %v685_v57 }
 0x1ca   : > { %v629_v59 = vpop.f32.mrf.mxu2 }
 0x1cb   : > { %v630_v61 = vadd.f32 %v1393_v58, %v629_v59  ;;  %v794_v59 = vld [vmem:[%s1490_s9 + $0x40] sm:$0xff] }
 0x1cc   : > { %813 = vmatpush.msrb.mxu0 %v794_v59  ;;  %946 = vmatpush.msrb.mxu2 %v794_v59 }
 0x1cd   : > { %v653_v62 = vmul.f32 0.5, %v630_v61  ;;  %v792_v61 = vld [vmem:[%s1490_s9 + $0x30] sm:$0xff] }
 0x1cf   : > { %1000 = vtanh.f32 %v653_v62  ;;  %v791_v62 = vld [vmem:[%s1490_s9 + $0x28] sm:$0xff] }
 0x1d2   : > { %v632_v63 = vpop.f32.mrf.mxu2 }
 0x1d3   : > { %v633_v0 = vadd.f32 %v1393_v58, %v632_v63  ;;  %v790_v63 = vld [vmem:[%s1490_s9 + $0x20] sm:$0xff] }
 0x1d5   : > { %v1001_v1 = vpop.eup %1000  ;;  %v654_v2 = vmul.f32 0.5, %v633_v0  ;;  %v789_v0 = vld [vmem:[%s1490_s9 + $0x18] sm:$0xff] }
 0x1d6   : > { %v669_v4 = vadd.f32 1.0, %v1001_v1  ;;  %v788_v1 = vld [vmem:[%s1490_s9 + $0x10] sm:$0xff] }
 0x1d7   : > { %1002 = vtanh.f32 %v654_v2  ;;  %v787_v2 = vld [vmem:[%s1490_s9 + $0x8] sm:$0xff] }
 0x1d8   : > { %v677_v5 = vmul.f32 0.5, %v669_v4  ;;  %v786_v4 = vld [vmem:[%s1490_s9] sm:$0xff] }
 0x1da   : > { %v635_v16 = vpop.f32.mrf.mxu2  ;;  %721 = vmatmul.f32.vlgmr.msra.gmra.mxu3 %v677_v5  ;;  %v966_v5 = vld [vmem:[%s1489_s8] ss:$0 sm:$0xff] }
 0x1db   : > { %v636_v6 = vadd.f32 %v1393_v58, %v635_v16 }
 0x1dd   : > { %v1003_v7 = vpop.eup %1002  ;;  %v655_v8 = vmul.f32 0.5, %v636_v6 }
 0x1de   : > { %v670_v10 = vadd.f32 1.0, %v1003_v7 }
 0x1df   : > { %1004 = vtanh.f32 %v655_v8 }
 0x1e0   : > { %v678_v11 = vmul.f32 0.5, %v670_v10 }
 0x1e2   : > { %v638_v22 = vpop.f32.mrf.mxu2  ;;  %724 = vmatmul.f32.gmra.mxu3 %v678_v11 }
 0x1e3   : > { %v639_v12 = vadd.f32 %v1393_v58, %v638_v22 }
 0x1e5   : > { %v1005_v13 = vpop.eup %1004  ;;  %v656_v14 = vmul.f32 0.5, %v639_v12 }
 0x1e6   : > { %v671_v18 = vadd.f32 1.0, %v1005_v13 }
 0x1e7   : > { %1006 = vtanh.f32 %v656_v14 }
 0x1e8   : > { %v679_v28 = vmul.f32 0.5, %v671_v18 }
 0x1ea   : > { %v641_v19 = vpop.f32.mrf.mxu2  ;;  %727 = vmatmul.f32.gmra.mxu3 %v679_v28 }
 0x1eb   : > { %v642_v20 = vadd.f32 %v1393_v58, %v641_v19 }
 0x1ed   : > { %v1007_v21 = vpop.eup %1006  ;;  %v657_v24 = vmul.f32 0.5, %v642_v20 }
 0x1ee   : > { %v672_v30 = vadd.f32 1.0, %v1007_v21 }
 0x1ef   : > { %1008 = vtanh.f32 %v657_v24 }
 0x1f0   : > { %v680_v25 = vmul.f32 0.5, %v672_v30 }
 0x1f2   : > { %v644_v26 = vpop.f32.mrf.mxu2  ;;  %730 = vmatmul.f32.gmra.mxu3 %v680_v25 }
 0x1f3   : > { %v645_v34 = vadd.f32 %v1393_v58, %v644_v26 }
 0x1f5   : > { %v1009_v36 = vpop.eup %1008  ;;  %v658_v37 = vmul.f32 0.5, %v645_v34 }
 0x1f6   : > { %v673_v38 = vadd.f32 1.0, %v1009_v36 }
 0x1f7   : > { %1010 = vtanh.f32 %v658_v37 }
 0x1f8   : > { %v681_v39 = vmul.f32 0.5, %v673_v38 }
 0x1fa   : > { %v647_v41 = vpop.f32.mrf.mxu2  ;;  %733 = vmatmul.f32.gmra.mxu3 %v681_v39 }
 0x1fb   : > { %v648_v44 = vadd.f32 %v1393_v58, %v647_v41 }
 0x1fd   : > { %v1011_v46 = vpop.eup %1010  ;;  %v659_v47 = vmul.f32 0.5, %v648_v44 }
 0x1fe   : > { %v674_v50 = vadd.f32 1.0, %v1011_v46 }
 0x1ff   : > { %1012 = vtanh.f32 %v659_v47 }
 0x200   : > { %v682_v51 = vmul.f32 0.5, %v674_v50 }
 0x202   : > { %v650_v52 = vpop.f32.mrf.mxu2  ;;  %736 = vmatmul.f32.gmra.mxu3 %v682_v51 }
 0x203   : > { %v651_v49 = vadd.f32 %v1393_v58, %v650_v52  ;;  %v793_v58 = vld [vmem:[%s1490_s9 + $0x38] sm:$0xff] }
 0x204   : > { %814 = vmatpush.msrb.mxu0 %v793_v58  ;;  %947 = vmatpush.msrb.mxu2 %v793_v58 }
 0x205   : > { %v1013_v29 = vpop.eup %1012  ;;  %v660_v53 = vmul.f32 0.5, %v651_v49 }
 0x206   : > { %v675_v31 = vadd.f32 1.0, %v1013_v29  ;;  %815 = vmatpush.msrb.mxu0 %v792_v61  ;;  %948 = vmatpush.msrb.mxu2 %v792_v61 }
 0x207   : > { %1014 = vtanh.f32 %v660_v53 }
 0x208   : > { %v683_v54 = vmul.f32 0.5, %v675_v31  ;;  %816 = vmatpush.msrb.mxu0 %v791_v62  ;;  %949 = vmatpush.msrb.mxu2 %v791_v62 }
 0x20a   : > { %739 = vmatmul.f32.gmra.mxu3 %v683_v54  ;;  %817 = vmatpush.msrb.mxu0 %v790_v63 }
 0x20b   : > { %950 = vmatpush.msrb.mxu2 %v790_v63 }
 0x20c   : > { %818 = vmatpush.msrb.mxu0 %v789_v0 }
 0x20d   : > { %v1015_v55 = vpop.eup %1014  ;;  %951 = vmatpush.msrb.mxu2 %v789_v0 }
 0x20e   : > { %v676_v56 = vadd.f32 1.0, %v1015_v55  ;;  %819 = vmatpush.msrb.mxu0 %v788_v1 }
 0x20f   : > { %952 = vmatpush.msrb.mxu2 %v788_v1 }
 0x210   : > { %v684_v57 = vmul.f32 0.5, %v676_v56  ;;  %820 = vmatpush.msrb.mxu0 %v787_v2 }
 0x211   : > { %953 = vmatpush.msrb.mxu2 %v787_v2 }
 0x212   : > { %742 = vmatmul.f32.gmra.mxu3 %v684_v57  ;;  %821 = vmatpush.msrb.mxu0 %v786_v4 }
 0x213   : > { %954 = vmatpush.msrb.mxu2 %v786_v4 }
 0x25d   : > { %v722_v16 = vpop.f32.mrf.mxu3 }
 0x25e   : > { %v723_v6 = vadd.f32 %v966_v5, %v722_v16 }
 0x260   : > { %v746_v7 = vmul.f32 0.5, %v723_v6 }
 0x262   : > { %1016 = vtanh.f32 %v746_v7 }
 0x265   : > { %v725_v8 = vpop.f32.mrf.mxu3 }
 0x266   : > { %v726_v10 = vadd.f32 %v966_v5, %v725_v8 }
 0x268   : > { %v1017_v11 = vpop.eup %1016  ;;  %v747_v22 = vmul.f32 0.5, %v726_v10 }
 0x269   : > { %v762_v12 = vadd.f32 1.0, %v1017_v11 }
 0x26a   : > { %1018 = vtanh.f32 %v747_v22 }
 0x26b   : > { %v770_v13 = vmul.f32 0.5, %v762_v12 }
 0x26d   : > { %v728_v14 = vpop.f32.mrf.mxu3  ;;  %v778_v18 = vadd.f32 %v770_v13, %v1305_v60 }
 0x26e   : > { %v729_v28 = vadd.f32 %v966_v5, %v728_v14 }
 0x26f   : > { %822 = vmatmul.f32.vlgmr.msrb.gmra.mxu0 %v778_v18 }
 0x270   : > { %v1019_v19 = vpop.eup %1018  ;;  %v748_v20 = vmul.f32 0.5, %v729_v28 }
 0x271   : > { %v763_v21 = vadd.f32 1.0, %v1019_v19 }
 0x272   : > { %1020 = vtanh.f32 %v748_v20 }
 0x273   : > { %v771_v24 = vmul.f32 0.5, %v763_v21 }
 0x275   : > { %v731_v30 = vpop.f32.mrf.mxu3  ;;  %v779_v25 = vadd.f32 %v771_v24, %v1310_v3 }
 0x276   : > { %v732_v26 = vadd.f32 %v966_v5, %v731_v30 }
 0x277   : > { %825 = vmatmul.f32.gmra.mxu0 %v779_v25 }
 0x278   : > { %v1021_v27 = vpop.eup %1020  ;;  %v749_v33 = vmul.f32 0.5, %v732_v26 }
 0x279   : > { %v764_v34 = vadd.f32 1.0, %v1021_v27 }
 0x27a   : > { %1022 = vtanh.f32 %v749_v33 }
 0x27b   : > { %v772_v35 = vmul.f32 0.5, %v764_v34 }
 0x27d   : > { %v734_v36 = vpop.f32.mrf.mxu3  ;;  %v780_v60 = vadd.f32 %v772_v35, %v1315_v9 }
 0x27e   : > { %v735_v37 = vadd.f32 %v966_v5, %v734_v36 }
 0x27f   : > { %828 = vmatmul.f32.gmra.mxu0 %v780_v60 }
 0x280   : > { %v1023_v38 = vpop.eup %1022  ;;  %v750_v17 = vmul.f32 0.5, %v735_v37 }
 0x281   : > { %v765_v39 = vadd.f32 1.0, %v1023_v38 }
 0x282   : > { %1024 = vtanh.f32 %v750_v17 }
 0x283   : > { %v773_v40 = vmul.f32 0.5, %v765_v39 }
 0x285   : > { %v737_v41 = vpop.f32.mrf.mxu3  ;;  %v781_v3 = vadd.f32 %v773_v40, %v1320_v15 }
 0x286   : > { %v738_v43 = vadd.f32 %v966_v5, %v737_v41 }
 0x287   : > { %831 = vmatmul.f32.gmra.mxu0 %v781_v3 }
 0x288   : > { %v1025_v44 = vpop.eup %1024  ;;  %v751_v45 = vmul.f32 0.5, %v738_v43 }
 0x289   : > { %v766_v46 = vadd.f32 1.0, %v1025_v44 }
 0x28a   : > { %1026 = vtanh.f32 %v751_v45 }
 0x28b   : > { %v774_v47 = vmul.f32 0.5, %v766_v46 }
 0x28d   : > { %v740_v50 = vpop.f32.mrf.mxu3  ;;  %v782_v9 = vadd.f32 %v774_v47, %v1337_v32 }
 0x28e   : > { %v741_v51 = vadd.f32 %v966_v5, %v740_v50 }
 0x28f   : > { %834 = vmatmul.f32.gmra.mxu0 %v782_v9 }
 0x290   : > { %v1027_v52 = vpop.eup %1026  ;;  %v752_v49 = vmul.f32 0.5, %v741_v51 }
 0x291   : > { %v767_v29 = vadd.f32 1.0, %v1027_v52 }
 0x292   : > { %1028 = vtanh.f32 %v752_v49 }
 0x293   : > { %v775_v53 = vmul.f32 0.5, %v767_v29 }
 0x295   : > { %v743_v31 = vpop.f32.mrf.mxu3  ;;  %v783_v15 = vadd.f32 %v775_v53, %v1354_v42  ;;  %v967_v42 = vld [vmem:[%s1491_s10] ss:$0 sm:$0xff] }
 0x296   : > { %v744_v54 = vadd.f32 %v966_v5, %v743_v31 }
 0x297   : > { %837 = vmatmul.f32.gmra.mxu0 %v783_v15 }
 0x298   : > { %v1029_v55 = vpop.eup %1028  ;;  %v753_v56 = vmul.f32 0.5, %v744_v54 }
 0x299   : > { %v768_v57 = vadd.f32 1.0, %v1029_v55 }
 0x29a   : > { %1030 = vtanh.f32 %v753_v56 }
 0x29b   : > { %v776_v59 = vmul.f32 0.5, %v768_v57 }
 0x29d   : > { %v784_v32 = vadd.f32 %v776_v59, %v1359_v48 }
 0x29f   : > { %840 = vmatmul.f32.vlgmr.msrb.gmra.mxu2 %v784_v32 }
 0x2a0   : > { %v1031_v58 = vpop.eup %1030 }
 0x2a1   : > { %v769_v61 = vadd.f32 1.0, %v1031_v58 }
 0x2a3   : > { %v777_v62 = vmul.f32 0.5, %v769_v61 }
 0x2a5   : > { %v785_v63 = vadd.f32 %v777_v62, %v1363_v23 }
 0x2a7   : > { %843 = vmatmul.f32.gmra.mxu2 %v785_v63 }
 0x2ec   : > { %v823_v0 = vpop.f32.mrf.mxu0 }
 0x2ed   : > { %v824_v1 = vadd.f32 %v967_v42, %v823_v0 }
 0x2ef   : > { %848 = vst.msk [vmem:[%s388_s15] sm:$0xff] %vm847_vm0, %v824_v1 }
 0x2f4   : > { %v826_v48 = vpop.f32.mrf.mxu0 }
 0x2f5   : > { %v827_v2 = vadd.f32 %v967_v42, %v826_v48 }
 0x2f7   : > { %849 = vst.msk [vmem:[%s388_s15 + $0x8] sm:$0xff] %vm847_vm0, %v827_v2 }
 0x2fc   : > { %v829_v23 = vpop.f32.mrf.mxu0 }
 0x2fd   : > { %v830_v4 = vadd.f32 %v967_v42, %v829_v23 }
 0x2ff   : > { %850 = vst.msk [vmem:[%s388_s15 + $0x10] sm:$0xff] %vm847_vm0, %v830_v4 }
 0x304   : > { %v832_v5 = vpop.f32.mrf.mxu0 }
 0x305   : > { %v833_v16 = vadd.f32 %v967_v42, %v832_v5 }
 0x307   : > { %851 = vst.msk [vmem:[%s388_s15 + $0x18] sm:$0xff] %vm847_vm0, %v833_v16 }
 0x30c   : > { %v835_v6 = vpop.f32.mrf.mxu0 }
 0x30d   : > { %v836_v7 = vadd.f32 %v967_v42, %v835_v6 }
 0x30f   : > { %852 = vst.msk [vmem:[%s388_s15 + $0x20] sm:$0xff] %vm847_vm0, %v836_v7 }
 0x314   : > { %v838_v8 = vpop.f32.mrf.mxu0 }
 0x315   : > { %v839_v10 = vadd.f32 %v967_v42, %v838_v8 }
 0x317   : > { %853 = vst.msk [vmem:[%s388_s15 + $0x28] sm:$0xff] %vm847_vm0, %v839_v10 }
 0x322   : > { %v841_v11 = vpop.f32.mrf.mxu2 }
 0x323   : > { %v842_v22 = vadd.f32 %v967_v42, %v841_v11 }
 0x325   : > { %854 = vst.msk [vmem:[%s388_s15 + $0x30] sm:$0xff] %vm847_vm0, %v842_v22 }
 0x32a   : > { %v844_v12 = vpop.f32.mrf.mxu2 }
 0x32b   : > { %v845_v13 = vadd.f32 %v967_v42, %v844_v12 }
 0x32d   : > { %855 = vst.msk [vmem:[%s388_s15 + $0x38] sm:$0xff] %vm847_vm0, %v845_v13 }
 0x32e PF: > { %s21_s17 = sadd.s32 1, %s1038_s17  }
 0x32f   : > { %p18_p4 = scmp.ge.s32.totalorder %s21_s17, 6  }
 0x331   :  { %20 = sbr.rel (!%p18_p4) target bundleno = 1 (0x1), region = 94 }

</bundles_post_ra>
